<compile_context>
chip_gen: v6e
topology: v6e:2x2x1
jax: 0.10.0
libtpu: 0.0.40
codegen_flags: <defaults>
</compile_context>

<pallas_src>
import functools
import math

import jax
import jax.numpy as jnp
from jax.experimental import pallas as pl
from jax.experimental.pallas import tpu as pltpu


def _round_up(x, m):
    return ((x + m - 1) // m) * m


# ---------------------------------------------------------------------------
# Kernel 1: hoisted input projection  xp = x @ W_ih^T + (b_ih + b_hh)
# One big MXU-friendly matmul over all (batch*time) rows, tiled over rows.
# ---------------------------------------------------------------------------
def proj_kernel(x_ref, w_ref, b_ref, o_ref):
    o_ref[...] = (
        jnp.dot(x_ref[...], w_ref[...], preferred_element_type=jnp.float32)
        + b_ref[...]
    ).astype(o_ref.dtype)


# ---------------------------------------------------------------------------
# Kernel 2: tanh recurrence over time + linear head on the final hidden state.
#   h_t = tanh(xp_t + h_{t-1} @ W_hh^T)   (bias already folded into xp)
#   out = h_T @ W_fc^T + b_fc
# Grid = (batch blocks ["parallel"], time chunks ["arbitrary"]). xp streams
# HBM->VMEM in (Bb, Tc, H) chunks (double buffered by Pallas); h persists in
# a VMEM scratch across the time axis.
# ---------------------------------------------------------------------------
def rnn_kernel(xp_ref, w_hh_ref, w_fc_ref, b_fc_ref, out_ref, h_ref,
               *, tc, t_real, needs_mask):
    t_blk = pl.program_id(1)

    @pl.when(t_blk == 0)
    def _():
        h_ref[...] = jnp.zeros_like(h_ref)

    # Loop-invariant hoists: one W_hh load and one h load per time chunk.
    w_hh = w_hh_ref[...]
    h = h_ref[...]

    # Fully unrolled (static) inner time loop: serial path per step is a
    # single (Bb,H)x(H,H) matmul + tanh; the xp adds are independent loads.
    for j in range(tc):
        pre = xp_ref[:, j, :] + jnp.dot(h, w_hh,
                                        preferred_element_type=jnp.float32)
        h_new = jnp.tanh(pre)
        if needs_mask:
            gt = t_blk * tc + j
            h = jnp.where(gt < t_real, h_new, h)
        else:
            h = h_new

    h_ref[...] = h

    @pl.when(t_blk == pl.num_programs(1) - 1)
    def _():
        out_ref[...] = (
            jnp.dot(h, w_fc_ref[...], preferred_element_type=jnp.float32)
            + b_fc_ref[...]
        ).astype(out_ref.dtype)


def simple_rnn_forward(x, params, *, time_chunk=128):
    """x: (B, T, D) float32, batch-first. Returns (B, O) float32."""
    B, T, D = x.shape
    H = params["w_hh"].shape[0]
    O = params["w_fc_out"].shape[0]
    f32 = jnp.float32

    # Lane/sublane-dense padded sizes.
    D_pad = _round_up(D, 128)
    H_pad = _round_up(H, 128)
    O_pad = _round_up(O, 128)
    B_pad = _round_up(B, 8)
    Bb = B_pad if B_pad <= 128 else 128
    B_pad = _round_up(B_pad, Bb)

    # Size the time chunk so double-buffered xp chunks stay small (safe even
    # for v7x's 64 MiB VMEM / ~32 MiB scoped default).
    bytes_per_t = Bb * H_pad * 4
    tc_cap = max(8, (4 * 1024 * 1024) // bytes_per_t)
    Tc = _round_up(min(T, time_chunk, tc_cap), 8)
    T_pad = _round_up(T, Tc)
    needs_mask = (T_pad != T)

    # Zero-padded inputs / weights. Zeros keep padded hidden lanes at exactly
    # 0 through the recurrence and keep them from feeding back into real lanes.
    x_p = jnp.zeros((B_pad, T_pad, D_pad), f32).at[:B, :T, :D].set(x.astype(f32))
    w_ih_t = jnp.zeros((D_pad, H_pad), f32).at[:D, :H].set(params["w_ih"].T.astype(f32))
    w_hh_t = jnp.zeros((H_pad, H_pad), f32).at[:H, :H].set(params["w_hh"].T.astype(f32))
    b_rnn = jnp.zeros((1, H_pad), f32).at[0, :H].set(
        (params["b_ih"] + params["b_hh"]).astype(f32))
    w_fc_t = jnp.zeros((H_pad, O_pad), f32).at[:H, :O].set(params["w_fc_out"].T.astype(f32))
    b_fc = jnp.zeros((1, O_pad), f32).at[0, :O].set(params["b_fc_out"].astype(f32))

    # ---- Kernel 1: input projection as one large tiled matmul ----
    M = B_pad * T_pad
    x_flat = x_p.reshape(M, D_pad)
    tm = M if M <= 512 else 512
    M2 = _round_up(M, tm)
    if M2 != M:
        x_flat = jnp.zeros((M2, D_pad), f32).at[:M].set(x_flat)

    xp_flat = pl.pallas_call(
        proj_kernel,
        out_shape=jax.ShapeDtypeStruct((M2, H_pad), f32),
        grid=(M2 // tm,),
        in_specs=[
            pl.BlockSpec((tm, D_pad), lambda i: (i, 0)),
            pl.BlockSpec((D_pad, H_pad), lambda i: (0, 0)),
            pl.BlockSpec((1, H_pad), lambda i: (0, 0)),
        ],
        out_specs=pl.BlockSpec((tm, H_pad), lambda i: (i, 0)),
        compiler_params=pltpu.CompilerParams(
            dimension_semantics=("parallel",)),
    )(x_flat, w_ih_t, b_rnn)
    xp = xp_flat[:M].reshape(B_pad, T_pad, H_pad)

    # ---- Kernel 2: serial recurrence + linear head ----
    kernel = functools.partial(rnn_kernel, tc=Tc, t_real=T, needs_mask=needs_mask)
    out_p = pl.pallas_call(
        kernel,
        out_shape=jax.ShapeDtypeStruct((B_pad, O_pad), f32),
        grid=(B_pad // Bb, T_pad // Tc),
        in_specs=[
            pl.BlockSpec((Bb, Tc, H_pad), lambda b, t: (b, t, 0)),   # xp chunk
            pl.BlockSpec((H_pad, H_pad), lambda b, t: (0, 0)),       # W_hh^T
            pl.BlockSpec((H_pad, O_pad), lambda b, t: (0, 0)),       # W_fc^T
            pl.BlockSpec((1, O_pad), lambda b, t: (0, 0)),           # b_fc
        ],
        out_specs=pl.BlockSpec((Bb, O_pad), lambda b, t: (b, 0)),
        scratch_shapes=[pltpu.VMEM((Bb, H_pad), f32)],
        compiler_params=pltpu.CompilerParams(
            dimension_semantics=("parallel", "arbitrary")),
    )(xp, w_hh_t, w_fc_t, b_fc)

    return out_p[:B, :O]


def init_params(key, input_size, hidden_size, output_size):
    """Deterministic init mirroring PyTorch's default U(-1/sqrt(H), 1/sqrt(H))."""
    ks = jax.random.split(key, 6)
    bound = 1.0 / math.sqrt(hidden_size)
    u = lambda k, shape: jax.random.uniform(k, shape, jnp.float32, -bound, bound)
    return {
        "w_ih": u(ks[0], (hidden_size, input_size)),    # weight_ih_l0
        "w_hh": u(ks[1], (hidden_size, hidden_size)),   # weight_hh_l0
        "b_ih": u(ks[2], (hidden_size,)),               # bias_ih_l0
        "b_hh": u(ks[3], (hidden_size,)),               # bias_hh_l0
        "w_fc_out": u(ks[4], (output_size, hidden_size)),  # fc.weight
        "b_fc_out": u(ks[5], (output_size,)),              # fc.bias
    }


def reference_forward(x, params):
    """Pure-JAX reference of the same math (correctness check)."""
    B, T, D = x.shape
    H = params["w_hh"].shape[0]
    h = jnp.zeros((B, H), jnp.float32)
    for t in range(T):
        h = jnp.tanh(
            x[:, t, :] @ params["w_ih"].T + params["b_ih"]
            + h @ params["w_hh"].T + params["b_hh"]
        )
    return h @ params["w_fc_out"].T + params["b_fc_out"]


if __name__ == "__main__":
    input_size = 10
    hidden_size = 20
    output_size = 10
    batch = 2
    seq_len = 8

    key = jax.random.PRNGKey(0)
    k_x, k_p = jax.random.split(key)
    x = jax.random.normal(k_x, (batch, seq_len, input_size), dtype=jnp.float32)
    params = init_params(k_p, input_size, hidden_size, output_size)

    out = simple_rnn_forward(x, params)
    out = jax.block_until_ready(out)

    ref = reference_forward(x, params)
    assert out.shape == (batch, output_size)
    assert jnp.allclose(out, ref, atol=1e-5, rtol=1e-5), "Pallas output mismatch"

    print("KERNEL_OK")
</pallas_src>

<mosaic_0001>
module attributes {stable_mosaic.version = 11 : i64} {
  func.func @proj_kernel(%arg0: i32, %arg1: memref<64x128xf32, #tpu.memory_space<vmem>>, %arg2: memref<128x128xf32, #tpu.memory_space<vmem>>, %arg3: memref<1x128xf32, #tpu.memory_space<vmem>>, %arg4: memref<64x128xf32, #tpu.memory_space<vmem>>) attributes {dimension_semantics = [#tpu.dimension_semantics<parallel>], iteration_bounds = array<i64: 1>, scalar_prefetch = 0 : i64, scratch_operands = 0 : i64, tpu.core_type = #tpu.core_type<tc>, window_params = [{transform_indices = @transform_0, window_bounds = array<i64: 64, 128>}, {pipeline_mode = #tpu.pipeline_mode<synchronous>, transform_indices = @transform_1, window_bounds = array<i64: 128, 128>}, {pipeline_mode = #tpu.pipeline_mode<synchronous>, transform_indices = @transform_2, window_bounds = array<i64: 1, 128>}, {transform_indices = @transform_3, window_bounds = array<i64: 64, 128>}]} {
    %c0 = arith.constant 0 : index
    %c0_0 = arith.constant 0 : index
    %0 = vector.load %arg1[%c0, %c0_0] : memref<64x128xf32, #tpu.memory_space<vmem>>, vector<64x128xf32>
    %c0_1 = arith.constant 0 : index
    %c0_2 = arith.constant 0 : index
    %1 = vector.load %arg2[%c0_1, %c0_2] : memref<128x128xf32, #tpu.memory_space<vmem>>, vector<128x128xf32>
    %cst = arith.constant dense<0.000000e+00> : vector<64x128xf32>
    %2 = tpu.matmul %0, %1, %cst {dimension_numbers = #tpu.dot_dimension_numbers<[1], [0], [0], [1], [0, 0, 1, 1], [], []>} : vector<64x128xf32>, vector<128x128xf32>, vector<64x128xf32> -> vector<64x128xf32>
    %c0_3 = arith.constant 0 : index
    %c0_4 = arith.constant 0 : index
    %3 = vector.load %arg3[%c0_3, %c0_4] : memref<1x128xf32, #tpu.memory_space<vmem>>, vector<1x128xf32>
    %4 = vector.broadcast %3 : vector<1x128xf32> to vector<64x128xf32>
    %5 = arith.addf %2, %4 : vector<64x128xf32>
    %c0_5 = arith.constant 0 : index
    %c0_6 = arith.constant 0 : index
    %6 = vector.load %arg4[%c0_5, %c0_6] : memref<64x128xf32, #tpu.memory_space<vmem>>, vector<64x128xf32>
    tpu.vector_store %arg4[%c0_5, %c0_6], %5 {strides = array<i32>} : memref<64x128xf32, #tpu.memory_space<vmem>>, vector<64x128xf32>,
    return
  }
  func.func @transform_0(%arg0: i32) -> (i32, i32) {
    %c0_i32 = arith.constant 0 : i32
    %c0_i32_0 = arith.constant 0 : i32
    return %arg0, %c0_i32 : i32, i32
  }
  func.func @transform_1(%arg0: i32) -> (i32, i32) {
    %c0_i32 = arith.constant 0 : i32
    %c0_i32_0 = arith.constant 0 : i32
    %c0_i32_1 = arith.constant 0 : i32
    return %c0_i32, %c0_i32_0 : i32, i32
  }
  func.func @transform_2(%arg0: i32) -> (i32, i32) {
    %c0_i32 = arith.constant 0 : i32
    %c0_i32_0 = arith.constant 0 : i32
    %c0_i32_1 = arith.constant 0 : i32
    return %c0_i32, %c0_i32_0 : i32, i32
  }
  func.func @transform_3(%arg0: i32) -> (i32, i32) {
    %c0_i32 = arith.constant 0 : i32
    %c0_i32_0 = arith.constant 0 : i32
    return %arg0, %c0_i32 : i32, i32
  }
}

</mosaic_0001>

<bundles_post_ra>
// kernel: tpu_custom_call.1
= control target key start
LH: loop header
LB: loop body
LE: loop exit
PB: predicated region body
PF: predicated region fallthrough
CT: control target
= control target key end

     0   :  { %8 = vsyncpa [#allocation3], 0  ;;  %s423_s0 = inlined_call_operand.hbm [shape: f32[64,128], index: 0, kind: input, shape index: {}]   ;;  %s424_s1 = inlined_call_operand.hbm [shape: f32[128,128], index: 1, kind: input, shape index: {}]   ;;  %s425_s2 = inlined_call_operand.vmem [shape: f32[1,128], index: 2, kind: input, shape index: {}]   ;;  %s426_s3 = inlined_call_operand.hbm [shape: f32[64,128], index: 3, kind: output, shape index: {}]  }
   0x1   :  { %9 = vsyncpa [#allocation6], 0 }
   0x2   :  { %10 = vsyncpa [#allocation4], 0  ;;  %s377_s12 = smov [#allocation2]  }
   0x3   :  { %s16_s13 = sshll.u32 %s377_s12, 4  ;;  %s17_s13 = int_to_ptr.vmem [resolvable:$true] %s16_s13 }
   0x4   :  { %s319_s14 = scalar_lea.vmem %s17_s13, 1024  ;;  %p324_p1 = scmp.lt.s32.totalorder %s17_s13, %s17_s13 }
   0x5   :  { %p320_p0 = scmp.ne.s32.totalorder %s17_s13, %s319_s14  ;;  %p325_p2 = scmp.lt.s32.totalorder %s319_s14, %s319_s14 }
   0x7   :  { %p326_p3 = por %p325_p2, %p324_p1 }
   0x9   :  { %p327_p4 = pnand %p326_p3, %p320_p0 }
   0xb   :  { %330 = shalt.err (!%p327_p4)
}
   0xc   :  { %s378_s15 = smov 128   ;;  %s379_s16 = smov 8  }
   0xd   :  { %22 = dma.hbm_to_vmem [thread:$0]  %s423_s0, 1024, %s17_s13, [#allocation3], %s378_s15, %s378_s15, %s379_s16  }
   0xe   :  { %s380_s19 = smov [#allocation5]  }
   0xf   :  { %s28_s20 = sshll.u32 %s380_s19, 4  ;;  %s29_s20 = int_to_ptr.vmem [resolvable:$true] %s28_s20 }
  0x10   :  { %s339_s21 = scalar_lea.vmem %s29_s20, 2048  ;;  %p344_p6 = scmp.lt.s32.totalorder %s29_s20, %s29_s20 }
  0x11   :  { %p340_p5 = scmp.ne.s32.totalorder %s29_s20, %s339_s21  ;;  %p345_p7 = scmp.lt.s32.totalorder %s339_s21, %s339_s21 }
  0x13   :  { %p346_p8 = por %p345_p7, %p344_p6 }
  0x15   :  { %p347_p9 = pnand %p346_p8, %p340_p5 }
  0x17   :  { %350 = shalt.err (!%p347_p9)
}
  0x18   :  { %34 = dma.hbm_to_vmem [thread:$0]  %s424_s1, 2048, %s29_s20, [#allocation6], %s378_s15, %s378_s15, %s379_s16  }
  0x19   :  { %371 = dma.done.wait [#allocation3], 1024  }
  0x1a   :  { %372 = vsyncadd [#allocation3], 4294966272 }
  0x1b   :  { %373 = dma.done.wait [#allocation6], 2048  }
  0x1c   :  { %374 = vsyncadd [#allocation6], 4294965248  ;;  %v66_v0 = vld [vmem:[#allocation5 + $0x78] sm:$0xff]  ;;  %v65_v1 = vld [vmem:[#allocation5 + $0x70] sm:$0xff]  ;;  %s381_s24 = smov [#allocation7]  }
  0x1d   :  { %230 = vmatprep.subr.mxu0 %v66_v0  ;;  %274 = vmatprep.subr.mxu1 %v66_v0  ;;  %v64_v2 = vld [vmem:[#allocation5 + $0x68] sm:$0xff]  ;;  %v63_v3 = vld [vmem:[#allocation5 + $0x60] sm:$0xff]  ;;  %v62_v4 = vld [vmem:[#allocation5 + $0x58] sm:$0xff]  ;;  %s192_s25 = sshll.u32 %s381_s24, 4  ;;  %s193_s25 = int_to_ptr.vmem [resolvable:$true] %s192_s25 }
  0x1e   :  { %231 = vmatpush3.msra.mxu0 %v66_v0  ;;  %290 = vmatpush3.msra.mxu1 %v66_v0  ;;  %v61_v5 = vld [vmem:[#allocation5 + $0x50] sm:$0xff]  ;;  %v60_v6 = vld [vmem:[#allocation5 + $0x48] sm:$0xff]  ;;  %v59_v7 = vld [vmem:[#allocation5 + $0x40] sm:$0xff]  ;;  %p356_p11 = scmp.lt.s32.totalorder %s193_s25, %s193_s25 }
  0x1f   :  { %232 = vmatprep.subr.mxu0 %v65_v1  ;;  %275 = vmatprep.subr.mxu1 %v65_v1  ;;  %v58_v8 = vld [vmem:[#allocation5 + $0x38] sm:$0xff]  ;;  %v57_v9 = vld [vmem:[#allocation5 + $0x30] sm:$0xff]  ;;  %v56_v10 = vld [vmem:[#allocation5 + $0x28] sm:$0xff] }
  0x20   :  { %233 = vmatpush3.msra.mxu0 %v65_v1  ;;  %291 = vmatpush3.msra.mxu1 %v65_v1  ;;  %v55_v11 = vld [vmem:[#allocation5 + $0x20] sm:$0xff]  ;;  %v54_v12 = vld [vmem:[#allocation5 + $0x18] sm:$0xff]  ;;  %v53_v13 = vld [vmem:[#allocation5 + $0x10] sm:$0xff] }
  0x21   :  { %234 = vmatprep.subr.mxu0 %v64_v2  ;;  %276 = vmatprep.subr.mxu1 %v64_v2  ;;  %v52_v14 = vld [vmem:[#allocation5 + $0x8] sm:$0xff]  ;;  %v51_v15 = vld [vmem:[#allocation5] sm:$0xff]  ;;  %v45_v20 = vld [vmem:[#allocation2 + $0x10] sm:$0xff] }
  0x22   :  { %235 = vmatpush3.msra.mxu0 %v64_v2  ;;  %292 = vmatpush3.msra.mxu1 %v64_v2  ;;  %v43_v16 = vld [vmem:[#allocation2] sm:$0xff]  ;;  %v44_v18 = vld [vmem:[#allocation2 + $0x8] sm:$0xff]  ;;  %v49_v21 = vld [vmem:[#allocation2 + $0x30] sm:$0xff] }
  0x23   :  { %236 = vmatprep.subr.mxu0 %v63_v3  ;;  %277 = vmatprep.subr.mxu1 %v63_v3  ;;  %v47_v17 = vld [vmem:[#allocation2 + $0x20] sm:$0xff]  ;;  %v48_v19 = vld [vmem:[#allocation2 + $0x28] sm:$0xff]  ;;  %v46_v22 = vld [vmem:[#allocation2 + $0x18] sm:$0xff] }
  0x24   :  { %237 = vmatpush3.msra.mxu0 %v63_v3  ;;  %293 = vmatpush3.msra.mxu1 %v63_v3  ;;  %v50_v23 = vld [vmem:[#allocation2 + $0x38] sm:$0xff]  ;;  %v205_v24 = vld [vmem:[%s425_s2] ss:$0 sm:$0xff]  ;;  %s351_s2 = scalar_lea.vmem %s193_s25, 1024 }
  0x25   :  { %238 = vmatprep.subr.mxu0 %v62_v4  ;;  %278 = vmatprep.subr.mxu1 %v62_v4  ;;  %p352_p10 = scmp.ne.s32.totalorder %s193_s25, %s351_s2  ;;  %p357_p12 = scmp.lt.s32.totalorder %s351_s2, %s351_s2 }
  0x26   :  { %239 = vmatpush3.msra.mxu0 %v62_v4  ;;  %294 = vmatpush3.msra.mxu1 %v62_v4 }
  0x27   :  { %240 = vmatprep.subr.mxu0 %v61_v5  ;;  %279 = vmatprep.subr.mxu1 %v61_v5  ;;  %p358_p13 = por %p357_p12, %p356_p11 }
  0x28   :  { %241 = vmatpush3.msra.mxu0 %v61_v5  ;;  %295 = vmatpush3.msra.mxu1 %v61_v5 }
  0x29   :  { %242 = vmatprep.subr.mxu0 %v60_v6  ;;  %280 = vmatprep.subr.mxu1 %v60_v6  ;;  %p359_p0 = pnand %p358_p13, %p352_p10 }
  0x2a   :  { %243 = vmatpush3.msra.mxu0 %v60_v6  ;;  %296 = vmatpush3.msra.mxu1 %v60_v6 }
  0x2b   :  { %244 = vmatprep.subr.mxu0 %v59_v7  ;;  %281 = vmatprep.subr.mxu1 %v59_v7 }
  0x2c   :  { %245 = vmatpush3.msra.mxu0 %v59_v7  ;;  %297 = vmatpush3.msra.mxu1 %v59_v7 }
  0x2d   :  { %246 = vmatprep.subr.mxu0 %v58_v8  ;;  %282 = vmatprep.subr.mxu1 %v58_v8 }
  0x2e   :  { %247 = vmatpush3.msra.mxu0 %v58_v8  ;;  %298 = vmatpush3.msra.mxu1 %v58_v8 }
  0x2f   :  { %248 = vmatprep.subr.mxu0 %v57_v9  ;;  %283 = vmatprep.subr.mxu1 %v57_v9 }
  0x30   :  { %249 = vmatpush3.msra.mxu0 %v57_v9  ;;  %299 = vmatpush3.msra.mxu1 %v57_v9 }
  0x31   :  { %250 = vmatprep.subr.mxu0 %v56_v10  ;;  %284 = vmatprep.subr.mxu1 %v56_v10 }
  0x32   :  { %251 = vmatpush3.msra.mxu0 %v56_v10  ;;  %300 = vmatpush3.msra.mxu1 %v56_v10 }
  0x33   :  { %252 = vmatprep.subr.mxu0 %v55_v11  ;;  %285 = vmatprep.subr.mxu1 %v55_v11 }
  0x34   :  { %253 = vmatpush3.msra.mxu0 %v55_v11  ;;  %301 = vmatpush3.msra.mxu1 %v55_v11 }
  0x35   :  { %254 = vmatprep.subr.mxu0 %v54_v12  ;;  %286 = vmatprep.subr.mxu1 %v54_v12 }
  0x36   :  { %255 = vmatpush3.msra.mxu0 %v54_v12  ;;  %302 = vmatpush3.msra.mxu1 %v54_v12 }
  0x37   :  { %256 = vmatprep.subr.mxu0 %v53_v13  ;;  %287 = vmatprep.subr.mxu1 %v53_v13 }
  0x38   :  { %257 = vmatpush3.msra.mxu0 %v53_v13  ;;  %303 = vmatpush3.msra.mxu1 %v53_v13 }
  0x39   :  { %258 = vmatprep.subr.mxu0 %v52_v14  ;;  %288 = vmatprep.subr.mxu1 %v52_v14 }
  0x3a   :  { %259 = vmatpush3.msra.mxu0 %v52_v14  ;;  %304 = vmatpush3.msra.mxu1 %v52_v14 }
  0x3b   :  { %260 = vmatprep.subr.mxu0 %v51_v15  ;;  %289 = vmatprep.subr.mxu1 %v51_v15 }
  0x3c   :  { %261 = vmatpush3.msra.mxu0 %v51_v15  ;;  %305 = vmatpush3.msra.mxu1 %v51_v15 }
  0x3d   :  { %262 = vmatprep.mubr.f32.mxu0 %v43_v16  ;;  %268 = vmatprep.mubr.f32.mxu1 %v47_v17 }
  0x3e   :  { %263 = vmatmul.mubr.f32.vlgmr.msra.gmra.mxu0 %v44_v18  ;;  %269 = vmatmul.mubr.f32.vlgmr.msra.gmra.mxu1 %v48_v19 }
  0x3f   :  { %265 = vmatprep.mubr.f32.mxu0 %v45_v20  ;;  %271 = vmatprep.mubr.f32.mxu1 %v49_v21 }
  0x42   :  { %266 = vmatmul.mubr.f32.gmra.mxu0 %v46_v22  ;;  %272 = vmatmul.mubr.f32.gmra.mxu1 %v50_v23 }
  0xfe   :  { %v264_v25 = vpop.f32.mrf.mxu0  ;;  %v270_v26 = vpop.f32.mrf.mxu1 }
  0xff   :  { %v146_v27 = vadd.f32 %v264_v25, %v205_v24  ;;  %v166_v28 = vadd.f32 %v270_v26, %v205_v24 }
 0x100   :  { %v140_v29 = vpop.f32.mrf.mxu0  ;;  %v160_v30 = vpop.f32.mrf.mxu1 }
 0x101   :  { %180 = vst [vmem:[#allocation7 + $0x8] sm:$0xff] %v146_v27  ;;  %184 = vst [vmem:[#allocation7 + $0x28] sm:$0xff] %v166_v28  ;;  %v141_v31 = vadd.f32 %v205_v24, %v140_v29  ;;  %v161_v32 = vadd.f32 %v205_v24, %v160_v30 }
 0x102   :  { %v267_v33 = vpop.f32.mrf.mxu0  ;;  %v273_v34 = vpop.f32.mrf.mxu1 }
 0x103   :  { %179 = vst [vmem:[#allocation7] sm:$0xff] %v141_v31  ;;  %183 = vst [vmem:[#allocation7 + $0x20] sm:$0xff] %v161_v32  ;;  %v156_v35 = vadd.f32 %v267_v33, %v205_v24  ;;  %v176_v36 = vadd.f32 %v273_v34, %v205_v24 }
 0x104   :  { %v150_v37 = vpop.f32.mrf.mxu0  ;;  %v170_v38 = vpop.f32.mrf.mxu1 }
 0x105   :  { %182 = vst [vmem:[#allocation7 + $0x18] sm:$0xff] %v156_v35  ;;  %186 = vst [vmem:[#allocation7 + $0x38] sm:$0xff] %v176_v36  ;;  %v151_v39 = vadd.f32 %v205_v24, %v150_v37  ;;  %v171_v40 = vadd.f32 %v205_v24, %v170_v38 }
 0x107   :  { %181 = vst [vmem:[#allocation7 + $0x10] sm:$0xff] %v151_v39  ;;  %185 = vst [vmem:[#allocation7 + $0x30] sm:$0xff] %v171_v40 }
 0x108   :  { %362 = shalt.err (!%p359_p0)
}
 0x109   :  { %198 = dma.vmem_to_hbm [thread:$0]  %s193_s25, 1024, %s426_s3, [#allocation4], %s378_s15, %s378_s15, %s379_s16  }
 0x10a   :  { %375 = dma.done.wait [#allocation4], 1024  }
 0x10b   :  { %376 = vsyncadd [#allocation4], 4294966272 }
 0x10c   :  { %202 = vsyncpa [#allocation3], 1 }
 0x10d   :  { %203 = vsyncpa [#allocation6], 1 }
 0x10e   :  { %204 = vsyncpa [#allocation4], 1 }

</bundles_post_ra>
